<compile_context>
chip_gen: v6e
topology: v6e:2x2x1
jax: 0.10.0
libtpu: 0.0.40
codegen_flags: <defaults>
</compile_context>

<pallas_src>
import functools

import jax
import jax.numpy as jnp
from jax.experimental import pallas as pl
from jax.experimental.pallas import tpu as pltpu


# ----------------------------------------------------------------------------
# helpers
# ----------------------------------------------------------------------------
def _round_up(n, m):
    return ((n + m - 1) // m) * m


def _pad_to(a, shape):
    pads = [(0, t - s) for s, t in zip(a.shape, shape)]
    if all(p == (0, 0) for p in pads):
        return a
    return jnp.pad(a, pads)


def _batch_tiling(b, max_tile=128):
    bp = _round_up(b, 8)
    if bp <= max_tile:
        return bp, bp
    bp = _round_up(b, max_tile)
    return bp, max_tile


def pack_i2h_params(weight, bias, n_inp, n_hid, *, compute_dtype=None):
    """Split / transpose / zero-pad the nn.Linear(i2h) params ONCE.

    weight: (n_hid, n_inp + 2*n_hid), PyTorch layout, cat order = (x, hz, hy).
    Returns:
      wx_p : (n_inp_p, n_hid_p)        -- input projection (hoisted)
      w_rec: (2*n_hid_p, n_hid_p)      -- recurrent weight, rows = [hz | hy]
      b_p  : (1, n_hid_p)              -- bias (folded into u by the wrapper)
    Zero padding keeps padded hidden lanes exactly 0 through the recurrence.
    """
    n_inp_p = _round_up(n_inp, 128)
    n_hid_p = _round_up(n_hid, 128)
    cdt = compute_dtype if compute_dtype is not None else weight.dtype
    wx = weight[:, :n_inp].T                       # (n_inp, n_hid)
    wz = weight[:, n_inp:n_inp + n_hid].T          # (n_hid, n_hid)
    wy = weight[:, n_inp + n_hid:].T               # (n_hid, n_hid)
    wx_p = _pad_to(wx, (n_inp_p, n_hid_p)).astype(cdt)
    w_rec = jnp.concatenate(
        [_pad_to(wz, (n_hid_p, n_hid_p)),
         _pad_to(wy, (n_hid_p, n_hid_p))], axis=0).astype(cdt)
    b_p = _pad_to(bias, (n_hid_p,)).reshape(1, n_hid_p)
    return wx_p, w_rec, b_p


# ----------------------------------------------------------------------------
# single cell step (matches coRNNCell.forward)
# ----------------------------------------------------------------------------
def _cornn_cell_kernel(x_ref, hy_ref, hz_ref, wx_ref, wrec_ref, b_ref,
                       hy_out_ref, hz_out_ref, *, dt, gamma, epsilon):
    cdt = wrec_ref.dtype
    hy = hy_ref[...].astype(jnp.float32)
    hz = hz_ref[...].astype(jnp.float32)

    rec = jnp.concatenate([hz_ref[...], hy_ref[...]], axis=1).astype(cdt)
    pre = jnp.dot(x_ref[...].astype(cdt), wx_ref[...],
                  preferred_element_type=jnp.float32)
    pre = pre + jnp.dot(rec, wrec_ref[...], preferred_element_type=jnp.float32)
    pre = pre + b_ref[...].astype(jnp.float32)

    hz_new = hz + dt * (jnp.tanh(pre) - gamma * hy - epsilon * hz)
    hy_new = hy + dt * hz_new

    hy_out_ref[...] = hy_new.astype(hy_out_ref.dtype)
    hz_out_ref[...] = hz_new.astype(hz_out_ref.dtype)


def cornn_cell(x, hy, hz, weight, bias, *, dt, gamma, epsilon,
               compute_dtype=None):
    """One coRNN cell step. x:(B,n_inp), hy/hz:(B,n_hid) -> (hy_new, hz_new)."""
    B, n_inp = x.shape
    n_hid = hy.shape[1]
    n_inp_p = _round_up(n_inp, 128)
    n_hid_p = _round_up(n_hid, 128)
    Bp, tb = _batch_tiling(B)

    wx_p, w_rec, b_p = pack_i2h_params(weight, bias, n_inp, n_hid,
                                       compute_dtype=compute_dtype)
    x_p = _pad_to(x, (Bp, n_inp_p))
    hy_p = _pad_to(hy, (Bp, n_hid_p))
    hz_p = _pad_to(hz, (Bp, n_hid_p))

    kernel = functools.partial(_cornn_cell_kernel, dt=float(dt),
                               gamma=float(gamma), epsilon=float(epsilon))

    hy_new_p, hz_new_p = pl.pallas_call(
        kernel,
        grid=(Bp // tb,),
        in_specs=[
            pl.BlockSpec((tb, n_inp_p), lambda i: (i, 0)),
            pl.BlockSpec((tb, n_hid_p), lambda i: (i, 0)),
            pl.BlockSpec((tb, n_hid_p), lambda i: (i, 0)),
            pl.BlockSpec((n_inp_p, n_hid_p), lambda i: (0, 0)),      # resident
            pl.BlockSpec((2 * n_hid_p, n_hid_p), lambda i: (0, 0)),  # resident
            pl.BlockSpec((1, n_hid_p), lambda i: (0, 0)),
        ],
        out_specs=[
            pl.BlockSpec((tb, n_hid_p), lambda i: (i, 0)),
            pl.BlockSpec((tb, n_hid_p), lambda i: (i, 0)),
        ],
        out_shape=[
            jax.ShapeDtypeStruct((Bp, n_hid_p), hy.dtype),
            jax.ShapeDtypeStruct((Bp, n_hid_p), hz.dtype),
        ],
        compiler_params=pltpu.CompilerParams(
            dimension_semantics=("parallel",)),
    )(x_p, hy_p, hz_p, wx_p, w_rec, b_p)

    return hy_new_p[:B, :n_hid], hz_new_p[:B, :n_hid]


# ----------------------------------------------------------------------------
# whole sequence: one pallas_call, Tt timesteps per grid step, resident W_rec
# ----------------------------------------------------------------------------
def _cornn_seq_kernel(u_ref, hy0_ref, hz0_ref, wrec_ref,
                      hy_seq_ref, hy_fin_ref, hz_fin_ref,
                      rec_st,
                      *, dt, gamma, epsilon, n_hid_p, t_blk, t_total):
    tblk = pl.program_id(1)

    @pl.when(tblk == 0)
    def _():
        rec_st[:, :n_hid_p] = hz0_ref[...].astype(jnp.float32)
        rec_st[:, n_hid_p:] = hy0_ref[...].astype(jnp.float32)

    cdt = wrec_ref.dtype
    w = wrec_ref[...]
    mask_tail = (t_total % t_blk) != 0            # static (Python) condition
    t_base = tblk * t_blk

    def step(s, carry):
        hz, hy = carry
        rec = jnp.concatenate([hz, hy], axis=1).astype(cdt)
        pre = u_ref[s] + jnp.dot(rec, w, preferred_element_type=jnp.float32)
        hz_new = hz + dt * (jnp.tanh(pre) - gamma * hy - epsilon * hz)
        hy_new = hy + dt * hz_new
        if mask_tail:
            # Freeze the state on padded tail steps (t >= t_total).
            gate = ((t_base + s) < t_total).astype(jnp.float32)
            hz_new = hz + gate * (hz_new - hz)
            hy_new = hy + gate * (hy_new - hy)
        hy_seq_ref[s] = hy_new.astype(hy_seq_ref.dtype)
        return hz_new, hy_new

    hz, hy = jax.lax.fori_loop(
        0, t_blk, step,
        (rec_st[:, :n_hid_p], rec_st[:, n_hid_p:]),
        unroll=True)

    rec_st[:, :n_hid_p] = hz
    rec_st[:, n_hid_p:] = hy

    @pl.when(tblk == pl.num_programs(1) - 1)
    def _():
        hy_fin_ref[...] = hy.astype(hy_fin_ref.dtype)
        hz_fin_ref[...] = hz.astype(hz_fin_ref.dtype)


def cornn_sequence(xs, hy0, hz0, weight, bias, *, dt, gamma, epsilon,
                   t_block=8, compute_dtype=None):
    """Run T coRNN cell steps. xs:(T,B,n_inp), hy0/hz0:(B,n_hid).

    Returns (hy_seq:(T,B,n_hid), hy_final:(B,n_hid), hz_final:(B,n_hid)).
    """
    T, B, n_inp = xs.shape
    n_hid = hy0.shape[1]
    n_inp_p = _round_up(n_inp, 128)
    n_hid_p = _round_up(n_hid, 128)
    Bp, tb = _batch_tiling(B)

    wx_p, w_rec, b_p = pack_i2h_params(weight, bias, n_inp, n_hid,
                                       compute_dtype=compute_dtype)
    cdt = w_rec.dtype

    xs_p = _pad_to(xs, (T, Bp, n_inp_p)).astype(cdt)
    hy_p = _pad_to(hy0, (Bp, n_hid_p))
    hz_p = _pad_to(hz0, (Bp, n_hid_p))

    # Hoisted, state-independent input projection: ONE big matmul over all
    # timesteps (full MXU M-utilization), bias folded in. f32 accumulate.
    u = jnp.dot(xs_p.reshape(T * Bp, n_inp_p), wx_p,
                preferred_element_type=jnp.float32)
    u = (u + b_p.astype(jnp.float32)).reshape(T, Bp, n_hid_p)

    Tt = max(1, min(int(t_block), T))
    Tp = _round_up(T, Tt)
    if Tp != T:
        u = jnp.pad(u, ((0, Tp - T), (0, 0), (0, 0)))

    kernel = functools.partial(
        _cornn_seq_kernel, dt=float(dt), gamma=float(gamma),
        epsilon=float(epsilon), n_hid_p=n_hid_p, t_blk=Tt, t_total=T)

    out_isz = jnp.dtype(hy0.dtype).itemsize
    w_isz = jnp.dtype(cdt).itemsize
    # Advisory cost estimate so XLA can overlap the projection / other ops.
    cost = pl.CostEstimate(
        flops=int(2 * Tp * Bp * (2 * n_hid_p) * n_hid_p + 10 * Tp * Bp * n_hid_p),
        transcendentals=int(Tp * Bp * n_hid_p),
        bytes_accessed=int(Tp * Bp * n_hid_p * 4            # u in (f32)
                           + Tp * Bp * n_hid_p * out_isz    # hy_seq out
                           + 2 * n_hid_p * n_hid_p * w_isz  # W_rec
                           + 4 * Bp * n_hid_p * out_isz))   # states in/out
    # VMEM budget (assume 2x buffering on pipelined blocks), clamped to be safe
    # on every generation (v7x has 64 MiB/TC).
    vmem_est = int(2 * (2 * n_hid_p) * n_hid_p * w_isz
                   + 2 * Tt * tb * n_hid_p * (4 + out_isz)
                   + 8 * tb * n_hid_p * out_isz
                   + tb * 2 * n_hid_p * 4)
    vmem_limit = min(64 * 1024 * 1024, max(32 * 1024 * 1024, 2 * vmem_est))

    hy_seq, hy_fin, hz_fin = pl.pallas_call(
        kernel,
        grid=(Bp // tb, Tp // Tt),
        in_specs=[
            pl.BlockSpec((Tt, tb, n_hid_p), lambda b, t: (t, b, 0)),     # u
            pl.BlockSpec((tb, n_hid_p), lambda b, t: (b, 0)),            # hy0
            pl.BlockSpec((tb, n_hid_p), lambda b, t: (b, 0)),            # hz0
            pl.BlockSpec((2 * n_hid_p, n_hid_p), lambda b, t: (0, 0)),   # W_rec
        ],
        out_specs=[
            pl.BlockSpec((Tt, tb, n_hid_p), lambda b, t: (t, b, 0)),     # hy_seq
            pl.BlockSpec((tb, n_hid_p), lambda b, t: (b, 0)),            # hy_fin
            pl.BlockSpec((tb, n_hid_p), lambda b, t: (b, 0)),            # hz_fin
        ],
        out_shape=[
            jax.ShapeDtypeStruct((Tp, Bp, n_hid_p), hy0.dtype),
            jax.ShapeDtypeStruct((Bp, n_hid_p), hy0.dtype),
            jax.ShapeDtypeStruct((Bp, n_hid_p), hz0.dtype),
        ],
        scratch_shapes=[
            pltpu.VMEM((tb, 2 * n_hid_p), jnp.float32),   # [hz | hy] state carry
        ],
        cost_estimate=cost,
        compiler_params=pltpu.CompilerParams(
            dimension_semantics=("parallel", "arbitrary"),
            vmem_limit_bytes=int(vmem_limit)),
    )(u, hy_p, hz_p, w_rec)

    return (hy_seq[:T, :B, :n_hid], hy_fin[:B, :n_hid], hz_fin[:B, :n_hid])


# ----------------------------------------------------------------------------
# pure-JAX references
# ----------------------------------------------------------------------------
def _cell_reference(x, hy, hz, weight, bias, dt, gamma, epsilon):
    inp = jnp.concatenate((x, hz, hy), axis=1)
    pre = inp @ weight.T + bias
    hz_new = hz + dt * (jnp.tanh(pre) - gamma * hy - epsilon * hz)
    hy_new = hy + dt * hz_new
    return hy_new, hz_new


def _seq_reference(xs, hy, hz, weight, bias, dt, gamma, epsilon):
    def step(carry, x):
        hy, hz = carry
        hy, hz = _cell_reference(x, hy, hz, weight, bias, dt, gamma, epsilon)
        return (hy, hz), hy
    (hy, hz), hy_seq = jax.lax.scan(step, (hy, hz), xs)
    return hy_seq, hy, hz


# ----------------------------------------------------------------------------
# test
# ----------------------------------------------------------------------------
if __name__ == "__main__":
    B, n_inp, n_hid, T = 8, 16, 128, 8
    dt, gamma, epsilon = 0.01, 1.0, 1.0

    key = jax.random.PRNGKey(0)
    kx, ky, kz, kw, kb, ks = jax.random.split(key, 6)

    x = jax.random.normal(kx, (B, n_inp), dtype=jnp.float32)
    hy = jax.random.normal(ky, (B, n_hid), dtype=jnp.float32)
    hz = jax.random.normal(kz, (B, n_hid), dtype=jnp.float32)
    xs = jax.random.normal(ks, (T, B, n_inp), dtype=jnp.float32)

    fan_in = n_inp + 2 * n_hid
    bound = 1.0 / (fan_in ** 0.5)
    weight = jax.random.uniform(kw, (n_hid, fan_in), jnp.float32, -bound, bound)
    bias = jax.random.uniform(kb, (n_hid,), jnp.float32, -bound, bound)

    # References.
    hy_ref1, hz_ref1 = _cell_reference(x, hy, hz, weight, bias, dt, gamma, epsilon)
    hy_seq_ref, hy_fin_ref, hz_fin_ref = _seq_reference(
        xs, hy, hz, weight, bias, dt, gamma, epsilon)

    # --- single cell step (module forward) ---
    hy_new, hz_new = cornn_cell(x, hy, hz, weight, bias,
                                dt=dt, gamma=gamma, epsilon=epsilon)
    jax.block_until_ready((hy_new, hz_new))
    assert jnp.allclose(hy_new, hy_ref1, atol=2e-3, rtol=2e-3)
    assert jnp.allclose(hz_new, hz_ref1, atol=2e-3, rtol=2e-3)

    # --- whole-sequence kernel, f32, T divisible by the time block ---
    hy_seq, hy_fin, hz_fin = cornn_sequence(
        xs, hy, hz, weight, bias, dt=dt, gamma=gamma, epsilon=epsilon, t_block=8)
    jax.block_until_ready((hy_seq, hy_fin, hz_fin))
    assert jnp.allclose(hy_seq, hy_seq_ref, atol=2e-3, rtol=2e-3)
    assert jnp.allclose(hy_fin, hy_fin_ref, atol=2e-3, rtol=2e-3)
    assert jnp.allclose(hz_fin, hz_fin_ref, atol=2e-3, rtol=2e-3)

    # --- ragged T (exercises the masked tail path: T=5, Tt=4) ---
    xs5 = xs[:5]
    hy_seq_ref5, hy_fin_ref5, hz_fin_ref5 = _seq_reference(
        xs5, hy, hz, weight, bias, dt, gamma, epsilon)
    hy_seq5, hy_fin5, hz_fin5 = cornn_sequence(
        xs5, hy, hz, weight, bias, dt=dt, gamma=gamma, epsilon=epsilon, t_block=4)
    jax.block_until_ready((hy_seq5, hy_fin5, hz_fin5))
    assert jnp.allclose(hy_seq5, hy_seq_ref5, atol=2e-3, rtol=2e-3)
    assert jnp.allclose(hy_fin5, hy_fin_ref5, atol=2e-3, rtol=2e-3)
    assert jnp.allclose(hz_fin5, hz_fin_ref5, atol=2e-3, rtol=2e-3)

    # --- whole-sequence kernel, bf16 params/activations on the MXU ---
    to16 = lambda a: a.astype(jnp.bfloat16)
    hy_seq16, hy_fin16, hz_fin16 = cornn_sequence(
        to16(xs), to16(hy), to16(hz), to16(weight), to16(bias),
        dt=dt, gamma=gamma, epsilon=epsilon, t_block=8)
    jax.block_until_ready((hy_seq16, hy_fin16, hz_fin16))
    assert jnp.allclose(hy_fin16.astype(jnp.float32), hy_fin_ref, atol=7.5e-2)
    assert jnp.allclose(hz_fin16.astype(jnp.float32), hz_fin_ref, atol=7.5e-2)

    print("KERNEL_OK")
</pallas_src>

<mosaic_0001>
module attributes {stable_mosaic.version = 11 : i64} {
  func.func @_cornn_cell_kernel(%arg0: i32, %arg1: memref<8x128xf32, #tpu.memory_space<vmem>>, %arg2: memref<8x128xf32, #tpu.memory_space<vmem>>, %arg3: memref<8x128xf32, #tpu.memory_space<vmem>>, %arg4: memref<128x128xf32, #tpu.memory_space<vmem>>, %arg5: memref<256x128xf32, #tpu.memory_space<vmem>>, %arg6: memref<1x128xf32, #tpu.memory_space<vmem>>, %arg7: memref<8x128xf32, #tpu.memory_space<vmem>>, %arg8: memref<8x128xf32, #tpu.memory_space<vmem>>) attributes {dimension_semantics = [#tpu.dimension_semantics<parallel>], iteration_bounds = array<i64: 1>, scalar_prefetch = 0 : i64, scratch_operands = 0 : i64, tpu.core_type = #tpu.core_type<tc>, window_params = [{transform_indices = @transform_0, window_bounds = array<i64: 8, 128>}, {transform_indices = @transform_1, window_bounds = array<i64: 8, 128>}, {transform_indices = @transform_2, window_bounds = array<i64: 8, 128>}, {pipeline_mode = #tpu.pipeline_mode<synchronous>, transform_indices = @transform_3, window_bounds = array<i64: 128, 128>}, {pipeline_mode = #tpu.pipeline_mode<synchronous>, transform_indices = @transform_4, window_bounds = array<i64: 256, 128>}, {pipeline_mode = #tpu.pipeline_mode<synchronous>, transform_indices = @transform_5, window_bounds = array<i64: 1, 128>}, {transform_indices = @transform_6, window_bounds = array<i64: 8, 128>}, {transform_indices = @transform_7, window_bounds = array<i64: 8, 128>}]} {
    %c0 = arith.constant 0 : index
    %c0_0 = arith.constant 0 : index
    %0 = vector.load %arg2[%c0, %c0_0] : memref<8x128xf32, #tpu.memory_space<vmem>>, vector<8x128xf32>
    %c0_1 = arith.constant 0 : index
    %c0_2 = arith.constant 0 : index
    %1 = vector.load %arg3[%c0_1, %c0_2] : memref<8x128xf32, #tpu.memory_space<vmem>>, vector<8x128xf32>
    %c0_3 = arith.constant 0 : index
    %c0_4 = arith.constant 0 : index
    %2 = vector.load %arg3[%c0_3, %c0_4] : memref<8x128xf32, #tpu.memory_space<vmem>>, vector<8x128xf32>
    %c0_5 = arith.constant 0 : index
    %c0_6 = arith.constant 0 : index
    %3 = vector.load %arg2[%c0_5, %c0_6] : memref<8x128xf32, #tpu.memory_space<vmem>>, vector<8x128xf32>
    %4 = tpu.concatenate %2, %3 in 1 : vector<8x128xf32>, vector<8x128xf32> -> vector<8x256xf32>
    %c0_7 = arith.constant 0 : index
    %c0_8 = arith.constant 0 : index
    %5 = vector.load %arg1[%c0_7, %c0_8] : memref<8x128xf32, #tpu.memory_space<vmem>>, vector<8x128xf32>
    %c0_9 = arith.constant 0 : index
    %c0_10 = arith.constant 0 : index
    %6 = vector.load %arg4[%c0_9, %c0_10] : memref<128x128xf32, #tpu.memory_space<vmem>>, vector<128x128xf32>
    %cst = arith.constant dense<0.000000e+00> : vector<8x128xf32>
    %7 = tpu.matmul %5, %6, %cst {dimension_numbers = #tpu.dot_dimension_numbers<[1], [0], [0], [1], [0, 0, 1, 1], [], []>} : vector<8x128xf32>, vector<128x128xf32>, vector<8x128xf32> -> vector<8x128xf32>
    %c0_11 = arith.constant 0 : index
    %c0_12 = arith.constant 0 : index
    %8 = vector.load %arg5[%c0_11, %c0_12] : memref<256x128xf32, #tpu.memory_space<vmem>>, vector<256x128xf32>
    %cst_13 = arith.constant dense<0.000000e+00> : vector<8x128xf32>
    %9 = tpu.matmul %4, %8, %cst_13 {dimension_numbers = #tpu.dot_dimension_numbers<[1], [0], [0], [1], [0, 0, 1, 1], [], []>} : vector<8x256xf32>, vector<256x128xf32>, vector<8x128xf32> -> vector<8x128xf32>
    %10 = arith.addf %7, %9 : vector<8x128xf32>
    %c0_14 = arith.constant 0 : index
    %c0_15 = arith.constant 0 : index
    %11 = vector.load %arg6[%c0_14, %c0_15] : memref<1x128xf32, #tpu.memory_space<vmem>>, vector<1x128xf32>
    %12 = vector.broadcast %11 : vector<1x128xf32> to vector<8x128xf32>
    %13 = arith.addf %10, %12 : vector<8x128xf32>
    %14 = math.tanh %13 : vector<8x128xf32>
    %cst_16 = arith.constant 1.000000e+00 : f32
    %15 = vector.broadcast %cst_16 : f32 to vector<8x128xf32>
    %16 = arith.mulf %15, %0 : vector<8x128xf32>
    %17 = arith.subf %14, %16 : vector<8x128xf32>
    %cst_17 = arith.constant 1.000000e+00 : f32
    %18 = vector.broadcast %cst_17 : f32 to vector<8x128xf32>
    %19 = arith.mulf %18, %1 : vector<8x128xf32>
    %20 = arith.subf %17, %19 : vector<8x128xf32>
    %cst_18 = arith.constant 0.00999999977 : f32
    %21 = vector.broadcast %cst_18 : f32 to vector<8x128xf32>
    %22 = arith.mulf %21, %20 : vector<8x128xf32>
    %23 = arith.addf %1, %22 : vector<8x128xf32>
    %cst_19 = arith.constant 0.00999999977 : f32
    %24 = vector.broadcast %cst_19 : f32 to vector<8x128xf32>
    %25 = arith.mulf %24, %23 : vector<8x128xf32>
    %26 = arith.addf %0, %25 : vector<8x128xf32>
    %c0_20 = arith.constant 0 : index
    %c0_21 = arith.constant 0 : index
    %27 = vector.load %arg7[%c0_20, %c0_21] : memref<8x128xf32, #tpu.memory_space<vmem>>, vector<8x128xf32>
    tpu.vector_store %arg7[%c0_20, %c0_21], %26 {strides = array<i32>} : memref<8x128xf32, #tpu.memory_space<vmem>>, vector<8x128xf32>,
    %c0_22 = arith.constant 0 : index
    %c0_23 = arith.constant 0 : index
    %28 = vector.load %arg8[%c0_22, %c0_23] : memref<8x128xf32, #tpu.memory_space<vmem>>, vector<8x128xf32>
    tpu.vector_store %arg8[%c0_22, %c0_23], %23 {strides = array<i32>} : memref<8x128xf32, #tpu.memory_space<vmem>>, vector<8x128xf32>,
    return
  }
  func.func @transform_0(%arg0: i32) -> (i32, i32) {
    %c0_i32 = arith.constant 0 : i32
    %c0_i32_0 = arith.constant 0 : i32
    return %arg0, %c0_i32 : i32, i32
  }
  func.func @transform_1(%arg0: i32) -> (i32, i32) {
    %c0_i32 = arith.constant 0 : i32
    %c0_i32_0 = arith.constant 0 : i32
    return %arg0, %c0_i32 : i32, i32
  }
  func.func @transform_2(%arg0: i32) -> (i32, i32) {
    %c0_i32 = arith.constant 0 : i32
    %c0_i32_0 = arith.constant 0 : i32
    return %arg0, %c0_i32 : i32, i32
  }
  func.func @transform_3(%arg0: i32) -> (i32, i32) {
    %c0_i32 = arith.constant 0 : i32
    %c0_i32_0 = arith.constant 0 : i32
    %c0_i32_1 = arith.constant 0 : i32
    return %c0_i32, %c0_i32_0 : i32, i32
  }
  func.func @transform_4(%arg0: i32) -> (i32, i32) {
    %c0_i32 = arith.constant 0 : i32
    %c0_i32_0 = arith.constant 0 : i32
    %c0_i32_1 = arith.constant 0 : i32
    return %c0_i32, %c0_i32_0 : i32, i32
  }
  func.func @transform_5(%arg0: i32) -> (i32, i32) {
    %c0_i32 = arith.constant 0 : i32
    %c0_i32_0 = arith.constant 0 : i32
    %c0_i32_1 = arith.constant 0 : i32
    return %c0_i32, %c0_i32_0 : i32, i32
  }
  func.func @transform_6(%arg0: i32) -> (i32, i32) {
    %c0_i32 = arith.constant 0 : i32
    %c0_i32_0 = arith.constant 0 : i32
    return %arg0, %c0_i32 : i32, i32
  }
  func.func @transform_7(%arg0: i32) -> (i32, i32) {
    %c0_i32 = arith.constant 0 : i32
    %c0_i32_0 = arith.constant 0 : i32
    return %arg0, %c0_i32 : i32, i32
  }
}

</mosaic_0001>

<bundles_post_ra>
// kernel: tpu_custom_call.1
= control target key start
LH: loop header
LB: loop body
LE: loop exit
PB: predicated region body
PF: predicated region fallthrough
CT: control target
= control target key end

     0   :  { %13 = vsyncpa [#allocation3], 0  ;;  %s677_s0 = inlined_call_operand.hbm [shape: f32[8,128], index: 0, kind: input, shape index: {}]   ;;  %s678_s1 = inlined_call_operand.hbm [shape: f32[8,128], index: 1, kind: input, shape index: {}]   ;;  %s679_s2 = inlined_call_operand.hbm [shape: f32[8,128], index: 2, kind: input, shape index: {}]   ;;  %s680_s3 = inlined_call_operand.hbm [shape: f32[128,128], index: 3, kind: input, shape index: {}]   ;;  %s681_s4 = inlined_call_operand.hbm [shape: f32[256,128], index: 4, kind: input, shape index: {}]   ;;  %s682_s5 = inlined_call_operand.vmem [shape: f32[1,128], index: 5, kind: input, shape index: {}]   ;;  %s683_s6 = inlined_call_operand.hbm [shape: f32[8,128], index: 6, kind: output, shape index: {0}]   ;;  %s684_s7 = inlined_call_operand.hbm [shape: f32[8,128], index: 7, kind: output, shape index: {1}]  }
   0x1   :  { %14 = vsyncpa [#allocation6], 0 }
   0x2   :  { %15 = vsyncpa [#allocation9], 0 }
   0x3   :  { %16 = vsyncpa [#allocation4], 0 }
   0x4   :  { %17 = vsyncpa [#allocation13], 0  ;;  %s579_s24 = smov [#allocation5]   ;;  %s580_s26 = smov [#allocation8]  }
   0x5   :  { %s34_s25 = sshll.u32 %s579_s24, 4  ;;  %s53_s27 = sshll.u32 %s580_s26, 4  ;;  %s35_s25 = int_to_ptr.vmem [resolvable:$true] %s34_s25  ;;  %s54_s27 = int_to_ptr.vmem [resolvable:$true] %s53_s27 }
   0x6   :  { %s437_s28 = scalar_lea.vmem %s35_s25, 128  ;;  %p442_p1 = scmp.lt.s32.totalorder %s35_s25, %s35_s25 }
   0x7   :  { %p438_p0 = scmp.ne.s32.totalorder %s35_s25, %s437_s28  ;;  %p443_p2 = scmp.lt.s32.totalorder %s437_s28, %s437_s28 }
   0x9   :  { %p444_p3 = por %p443_p2, %p442_p1 }
   0xb   :  { %p445_p4 = pnand %p444_p3, %p438_p0 }
   0xd   :  { %448 = shalt.err (!%p445_p4)
}
   0xe   :  { %37 = dma.hbm_to_vmem [thread:$0]  %s678_s1, 128, %s35_s25, [#allocation6]  }
   0xf   :  { %s457_s8 = scalar_lea.vmem %s54_s27, 2048  ;;  %p462_p6 = scmp.lt.s32.totalorder %s54_s27, %s54_s27 }
  0x10   :  { %p458_p5 = scmp.ne.s32.totalorder %s54_s27, %s457_s8  ;;  %p463_p7 = scmp.lt.s32.totalorder %s457_s8, %s457_s8 }
  0x12   :  { %p464_p8 = por %p463_p7, %p462_p6 }
  0x14   :  { %p465_p9 = pnand %p464_p8, %p458_p5 }
  0x16   :  { %468 = shalt.err (!%p465_p9)
}
  0x17   :  { %s581_s9 = smov 128   ;;  %s582_s10 = smov 8  }
  0x18   :  { %59 = dma.hbm_to_vmem [thread:$0]  %s680_s3, 2048, %s54_s27, [#allocation9], %s581_s9, %s581_s9, %s582_s10  }
  0x19   :  { %s583_s13 = smov [#allocation2]   ;;  %s584_s15 = smov [#allocation7]  }
  0x1a   :  { %s24_s14 = sshll.u32 %s583_s13, 4  ;;  %s44_s1 = sshll.u32 %s584_s15, 4  ;;  %s25_s14 = int_to_ptr.vmem [resolvable:$true] %s24_s14  ;;  %s45_s1 = int_to_ptr.vmem [resolvable:$true] %s44_s1 }
  0x1b   :  { %s477_s16 = scalar_lea.vmem %s25_s14, 128  ;;  %p482_p11 = scmp.lt.s32.totalorder %s25_s14, %s25_s14 }
  0x1c   :  { %p478_p10 = scmp.ne.s32.totalorder %s25_s14, %s477_s16  ;;  %p483_p12 = scmp.lt.s32.totalorder %s477_s16, %s477_s16 }
  0x1e   :  { %p484_p13 = por %p483_p12, %p482_p11 }
  0x20   :  { %p485_p0 = pnand %p484_p13, %p478_p10 }
  0x22   :  { %488 = shalt.err (!%p485_p0)
}
  0x23   :  { %27 = dma.hbm_to_vmem [thread:$0]  %s677_s0, 128, %s25_s14, [#allocation3]  }
  0x24   :  { %s497_s19 = scalar_lea.vmem %s45_s1, 128  ;;  %p502_p2 = scmp.lt.s32.totalorder %s45_s1, %s45_s1 }
  0x25   :  { %p498_p1 = scmp.ne.s32.totalorder %s45_s1, %s497_s19  ;;  %p503_p3 = scmp.lt.s32.totalorder %s497_s19, %s497_s19 }
  0x27   :  { %p504_p4 = por %p503_p3, %p502_p2 }
  0x29   :  { %p505_p5 = pnand %p504_p4, %p498_p1 }
  0x2b   :  { %508 = shalt.err (!%p505_p5)
}
  0x2c   :  { %47 = dma.hbm_to_vmem [thread:$0]  %s679_s2, 128, %s45_s1, [#allocation6]  }
  0x2d   :  { %s585_s21 = smov [#allocation10]  }
  0x2e   :  { %s65_s22 = sshll.u32 %s585_s21, 4  ;;  %s66_s22 = int_to_ptr.vmem [resolvable:$true] %s65_s22 }
  0x2f   :  { %s517_s23 = scalar_lea.vmem %s66_s22, 4096  ;;  %p522_p7 = scmp.lt.s32.totalorder %s66_s22, %s66_s22 }
  0x30   :  { %p518_p6 = scmp.ne.s32.totalorder %s66_s22, %s517_s23  ;;  %p523_p8 = scmp.lt.s32.totalorder %s517_s23, %s517_s23 }
  0x32   :  { %p524_p9 = por %p523_p8, %p522_p7 }
  0x34   :  { %p525_p10 = pnand %p524_p9, %p518_p6 }
  0x36   :  { %528 = shalt.err (!%p525_p10)
}
  0x37   :  { %71 = dma.hbm_to_vmem [thread:$0]  %s681_s4, 4096, %s66_s22, [#allocation9], %s581_s9, %s581_s9, %s582_s10  }
  0x38   :  { %569 = dma.done.wait [#allocation3], 128  }
  0x39   :  { %570 = vsyncadd [#allocation3], 4294967168 }
  0x3a   :  { %571 = dma.done.wait [#allocation6], 256  }
  0x3b   :  { %572 = vsyncadd [#allocation6], 4294967040 }
  0x3c   :  { %573 = dma.done.wait [#allocation9], 6144  }
  0x3d   :  { %574 = vsyncadd [#allocation9], 4294961152  ;;  %v586_v0 = vmov 0.0   ;;  %vm587_vm0 = vmmov 0   ;;  %v139_v1 = vld [vmem:[#allocation10 + $0xf8] sm:$0xff]  ;;  %v138_v3 = vld [vmem:[#allocation10 + $0xf0] sm:$0xff] }
  0x3e   :  { %381 = vmatprep.subr.mxu1 %v586_v0  ;;  %413 = vmatprep.mubr.msk.f32.mxu1 %vm587_vm0, %v586_v0  ;;  %v123_v2 = vld [vmem:[#allocation10 + $0x78] sm:$0xff]  ;;  %v122_v4 = vld [vmem:[#allocation10 + $0x70] sm:$0xff]  ;;  %v137_v6 = vld [vmem:[#allocation10 + $0xe8] sm:$0xff]  ;;  %s588_s25 = smov [#allocation12]   ;;  %s589_s27 = smov [#allocation11]  }
  0x3f   :  { %329 = vmatprep.subr.mxu0 %v139_v1  ;;  %v107_v5 = vld [vmem:[#allocation8 + $0x78] sm:$0xff]  ;;  %v106_v7 = vld [vmem:[#allocation8 + $0x70] sm:$0xff]  ;;  %v121_v8 = vld [vmem:[#allocation10 + $0x68] sm:$0xff]  ;;  %s313_s26 = sshll.u32 %s588_s25, 4  ;;  %s303_s28 = sshll.u32 %s589_s27, 4  ;;  %s314_s26 = int_to_ptr.vmem [resolvable:$true] %s313_s26  ;;  %s304_s28 = int_to_ptr.vmem [resolvable:$true] %s303_s28 }
  0x40   :  { %330 = vmatpush3.msra.mxu0 %v123_v2  ;;  %382 = vmatpush3.msra.mxu1 %v107_v5  ;;  %v105_v9 = vld [vmem:[#allocation8 + $0x68] sm:$0xff]  ;;  %v136_v10 = vld [vmem:[#allocation10 + $0xe0] sm:$0xff]  ;;  %v135_v13 = vld [vmem:[#allocation10 + $0xd8] sm:$0xff]  ;;  %s529_s29 = scalar_lea.vmem %s314_s26, 128  ;;  %p534_p12 = scmp.lt.s32.totalorder %s314_s26, %s314_s26 }
  0x41   :  { %331 = vmatprep.subr.mxu0 %v138_v3  ;;  %383 = vmatprep.subr.mxu1 %v586_v0  ;;  %v120_v11 = vld [vmem:[#allocation10 + $0x60] sm:$0xff]  ;;  %v119_v14 = vld [vmem:[#allocation10 + $0x58] sm:$0xff]  ;;  %v134_v16 = vld [vmem:[#allocation10 + $0xd0] sm:$0xff]  ;;  %p530_p11 = scmp.ne.s32.totalorder %s314_s26, %s529_s29  ;;  %p535_p13 = scmp.lt.s32.totalorder %s529_s29, %s529_s29 }
  0x42   :  { %332 = vmatpush3.msra.mxu0 %v122_v4  ;;  %384 = vmatpush3.msra.mxu1 %v106_v7  ;;  %v104_v12 = vld [vmem:[#allocation8 + $0x60] sm:$0xff]  ;;  %v103_v15 = vld [vmem:[#allocation8 + $0x58] sm:$0xff]  ;;  %v118_v17 = vld [vmem:[#allocation10 + $0x50] sm:$0xff] }
  0x43   :  { %333 = vmatprep.subr.mxu0 %v137_v6  ;;  %385 = vmatprep.subr.mxu1 %v586_v0  ;;  %v102_v18 = vld [vmem:[#allocation8 + $0x50] sm:$0xff]  ;;  %v133_v19 = vld [vmem:[#allocation10 + $0xc8] sm:$0xff]  ;;  %v132_v22 = vld [vmem:[#allocation10 + $0xc0] sm:$0xff]  ;;  %p536_p0 = por %p535_p13, %p534_p12 }
  0x44   :  { %334 = vmatpush3.msra.mxu0 %v121_v8  ;;  %386 = vmatpush3.msra.mxu1 %v105_v9  ;;  %v117_v20 = vld [vmem:[#allocation10 + $0x48] sm:$0xff]  ;;  %v116_v23 = vld [vmem:[#allocation10 + $0x40] sm:$0xff]  ;;  %v131_v25 = vld [vmem:[#allocation10 + $0xb8] sm:$0xff] }
  0x45   :  { %335 = vmatprep.subr.mxu0 %v136_v10  ;;  %387 = vmatprep.subr.mxu1 %v586_v0  ;;  %v101_v21 = vld [vmem:[#allocation8 + $0x48] sm:$0xff]  ;;  %v100_v24 = vld [vmem:[#allocation8 + $0x40] sm:$0xff]  ;;  %v115_v26 = vld [vmem:[#allocation10 + $0x38] sm:$0xff]  ;;  %p537_p1 = pnand %p536_p0, %p530_p11 }
  0x46   :  { %336 = vmatpush3.msra.mxu0 %v120_v11  ;;  %388 = vmatpush3.msra.mxu1 %v104_v12  ;;  %v99_v27 = vld [vmem:[#allocation8 + $0x38] sm:$0xff]  ;;  %v130_v28 = vld [vmem:[#allocation10 + $0xb0] sm:$0xff]  ;;  %v129_v31 = vld [vmem:[#allocation10 + $0xa8] sm:$0xff] }
  0x47   :  { %337 = vmatprep.subr.mxu0 %v135_v13  ;;  %389 = vmatprep.subr.mxu1 %v586_v0  ;;  %v114_v29 = vld [vmem:[#allocation10 + $0x30] sm:$0xff]  ;;  %v113_v32 = vld [vmem:[#allocation10 + $0x28] sm:$0xff]  ;;  %v128_v34 = vld [vmem:[#allocation10 + $0xa0] sm:$0xff] }
  0x48   :  { %338 = vmatpush3.msra.mxu0 %v119_v14  ;;  %390 = vmatpush3.msra.mxu1 %v103_v15  ;;  %v98_v30 = vld [vmem:[#allocation8 + $0x30] sm:$0xff]  ;;  %v97_v33 = vld [vmem:[#allocation8 + $0x28] sm:$0xff]  ;;  %v112_v35 = vld [vmem:[#allocation10 + $0x20] sm:$0xff] }
  0x49   :  { %339 = vmatprep.subr.mxu0 %v134_v16  ;;  %391 = vmatprep.subr.mxu1 %v586_v0  ;;  %v96_v36 = vld [vmem:[#allocation8 + $0x20] sm:$0xff]  ;;  %v127_v37 = vld [vmem:[#allocation10 + $0x98] sm:$0xff]  ;;  %v126_v40 = vld [vmem:[#allocation10 + $0x90] sm:$0xff] }
  0x4a   :  { %340 = vmatpush3.msra.mxu0 %v118_v17  ;;  %392 = vmatpush3.msra.mxu1 %v102_v18  ;;  %v111_v38 = vld [vmem:[#allocation10 + $0x18] sm:$0xff]  ;;  %v110_v41 = vld [vmem:[#allocation10 + $0x10] sm:$0xff]  ;;  %v125_v43 = vld [vmem:[#allocation10 + $0x88] sm:$0xff] }
  0x4b   :  { %341 = vmatprep.subr.mxu0 %v133_v19  ;;  %393 = vmatprep.subr.mxu1 %v586_v0  ;;  %v95_v39 = vld [vmem:[#allocation8 + $0x18] sm:$0xff]  ;;  %v94_v42 = vld [vmem:[#allocation8 + $0x10] sm:$0xff]  ;;  %v109_v44 = vld [vmem:[#allocation10 + $0x8] sm:$0xff] }
  0x4c   :  { %342 = vmatpush3.msra.mxu0 %v117_v20  ;;  %394 = vmatpush3.msra.mxu1 %v101_v21  ;;  %v89_v45 = vld [vmem:[#allocation5] sm:$0xff]  ;;  %v124_v46 = vld [vmem:[#allocation10 + $0x80] sm:$0xff]  ;;  %v93_v47 = vld [vmem:[#allocation8 + $0x8] sm:$0xff] }
  0x4d   :  { %343 = vmatprep.subr.mxu0 %v132_v22  ;;  %395 = vmatprep.subr.mxu1 %v586_v0  ;;  %v108_v48 = vld [vmem:[#allocation10] sm:$0xff]  ;;  %v90_v49 = vld [vmem:[#allocation7] sm:$0xff]  ;;  %v91_v51 = vld [vmem:[#allocation2] sm:$0xff] }
  0x4e   :  { %344 = vmatpush3.msra.mxu0 %v116_v23  ;;  %396 = vmatpush3.msra.mxu1 %v100_v24  ;;  %v92_v50 = vld [vmem:[#allocation8] sm:$0xff]  ;;  %v328_v57 = vld [vmem:[%s682_s5] ss:$0 sm:$0xff] }
  0x4f   :  { %345 = vmatprep.subr.mxu0 %v131_v25  ;;  %397 = vmatprep.subr.mxu1 %v586_v0 }
  0x50   :  { %346 = vmatpush3.msra.mxu0 %v115_v26  ;;  %398 = vmatpush3.msra.mxu1 %v99_v27 }
  0x51   :  { %347 = vmatprep.subr.mxu0 %v130_v28  ;;  %399 = vmatprep.subr.mxu1 %v586_v0 }
  0x52   :  { %348 = vmatpush3.msra.mxu0 %v114_v29  ;;  %400 = vmatpush3.msra.mxu1 %v98_v30 }
  0x53   :  { %349 = vmatprep.subr.mxu0 %v129_v31  ;;  %401 = vmatprep.subr.mxu1 %v586_v0 }
  0x54   :  { %350 = vmatpush3.msra.mxu0 %v113_v32  ;;  %402 = vmatpush3.msra.mxu1 %v97_v33 }
  0x55   :  { %351 = vmatprep.subr.mxu0 %v128_v34  ;;  %403 = vmatprep.subr.mxu1 %v586_v0 }
  0x56   :  { %352 = vmatpush3.msra.mxu0 %v112_v35  ;;  %404 = vmatpush3.msra.mxu1 %v96_v36 }
  0x57   :  { %353 = vmatprep.subr.mxu0 %v127_v37  ;;  %405 = vmatprep.subr.mxu1 %v586_v0 }
  0x58   :  { %354 = vmatpush3.msra.mxu0 %v111_v38  ;;  %406 = vmatpush3.msra.mxu1 %v95_v39 }
  0x59   :  { %355 = vmatprep.subr.mxu0 %v126_v40  ;;  %407 = vmatprep.subr.mxu1 %v586_v0 }
  0x5a   :  { %356 = vmatpush3.msra.mxu0 %v110_v41  ;;  %408 = vmatpush3.msra.mxu1 %v94_v42 }
  0x5b   :  { %357 = vmatprep.subr.mxu0 %v125_v43  ;;  %409 = vmatprep.subr.mxu1 %v586_v0 }
  0x5c   :  { %358 = vmatpush3.msra.mxu0 %v109_v44  ;;  %204 = vmatprep.mubr.f32.mxu0 %v89_v45 }
  0x5d   :  { %359 = vmatprep.subr.mxu0 %v124_v46  ;;  %410 = vmatpush3.msra.mxu1 %v93_v47 }
  0x5e   :  { %360 = vmatpush3.msra.mxu0 %v108_v48  ;;  %411 = vmatprep.subr.mxu1 %v586_v0 }
  0x5f   :  { %205 = vmatmul.mubr.f32.vlgmr.msra.gmra.mxu0 %v90_v49  ;;  %412 = vmatpush3.msra.mxu1 %v92_v50 }
  0x60   :  { %414 = vmatmul.mubr.f32.vlgmr.msra.gmra.mxu1 %v91_v51 }
 0x11f   :  { %v361_v52 = vpop.f32.mrf.mxu0 }
 0x120   :  { %v276_v53 = vpop.f32.mrf.mxu1 }
 0x121   :  { %v362_v54 = vpop.f32.mrf.mxu0 }
 0x122   :  { %v363_v55 = vadd.f32 %v362_v54, %v361_v52  ;;  %v415_v56 = vpop.f32.mrf.mxu1 }
 0x124   :  { %v277_v58 = vadd.f32 %v363_v55, %v276_v53 }
 0x126   :  { %v287_v59 = vadd.f32 %v328_v57, %v277_v58 }
 0x128   :  { %427 = vtanh.f32 %v287_v59 }
 0x135   :  { %v428_v60 = vpop.eup %427 }
 0x136   :  { %v289_v61 = vsub.f32 %v428_v60, %v89_v45 }
 0x138   :  { %v290_v62 = vsub.f32 %v289_v61, %v90_v49 }
 0x13a   :  { %v291_v63 = vmul.f32 0.01, %v290_v62 }
 0x13c   :  { %v292_v0 = vadd.f32 %v291_v63, %v90_v49 }
 0x13e   :  { %v293_v1 = vmul.f32 0.01, %v292_v0  ;;  %296 = vst [vmem:[#allocation12] sm:$0xff] %v292_v0 }
 0x13f   :  { %540 = shalt.err (!%p537_p1)
}
 0x140   :  { %316 = dma.vmem_to_hbm [thread:$0]  %s314_s26, 128, %s684_s7, [#allocation13]   ;;  %v294_v2 = vadd.f32 %v293_v1, %v89_v45 }
 0x141   :  { %s549_s8 = scalar_lea.vmem %s304_s28, 128  ;;  %p554_p3 = scmp.lt.s32.totalorder %s304_s28, %s304_s28 }
 0x142   :  { %295 = vst [vmem:[#allocation11] sm:$0xff] %v294_v2  ;;  %p550_p2 = scmp.ne.s32.totalorder %s304_s28, %s549_s8  ;;  %p555_p4 = scmp.lt.s32.totalorder %s549_s8, %s549_s8 }
 0x144   :  { %p556_p5 = por %p555_p4, %p554_p3 }
 0x146   :  { %p557_p6 = pnand %p556_p5, %p550_p2 }
 0x148   :  { %560 = shalt.err (!%p557_p6)
}
 0x149   :  { %306 = dma.vmem_to_hbm [thread:$0]  %s304_s28, 128, %s683_s6, [#allocation4]  }
 0x14a   :  { %575 = dma.done.wait [#allocation4], 128  }
 0x14b   :  { %576 = vsyncadd [#allocation4], 4294967168 }
 0x14c   :  { %577 = dma.done.wait [#allocation13], 128  }
 0x14d   :  { %578 = vsyncadd [#allocation13], 4294967168 }
 0x14e   :  { %323 = vsyncpa [#allocation3], 1 }
 0x14f   :  { %324 = vsyncpa [#allocation6], 1 }
 0x150   :  { %325 = vsyncpa [#allocation9], 1 }
 0x151   :  { %326 = vsyncpa [#allocation4], 1 }
 0x152   :  { %327 = vsyncpa [#allocation13], 1 }

</bundles_post_ra>
